<compile_context>
chip_gen: v7x
topology: tpu7x:2x2x1
jax: 0.10.0
libtpu: 0.0.40
codegen_flags: <defaults>
</compile_context>

<pallas_src>
import functools

import jax
import jax.numpy as jnp
from jax.experimental import pallas as pl
from jax.experimental.pallas import tpu as pltpu


def _round_up(x, m):
    return (x + m - 1) // m * m


# Batch-tile granularity: 16 keeps the bf16 output tile sublane-packed.
_TILE_G = 16


def _choose_batch_tile(B, block_b):
    """Pick a sublane-aligned batch tile that minimizes zero-row padding and,
    for big enough batches, guarantees >=2 grid steps (v7x megacore)."""
    BpG = _round_up(B, _TILE_G)
    cap = min(_round_up(block_b, _TILE_G), BpG)
    if BpG > 64:
        # at least 2 grid steps so the "parallel" batch axis can split across cores
        cap = min(cap, _round_up(-(-BpG // 2), _TILE_G))
    cap = max(cap, _TILE_G)
    best_tb, best_pad = _TILE_G, None
    for t in range(_TILE_G, cap + 1, _TILE_G):
        pad = _round_up(B, t) - B
        if best_pad is None or pad < best_pad or (pad == best_pad and t > best_tb):
            best_tb, best_pad = t, pad
    return best_tb


def _resident_spec(shape):
    """Weights/biases: constant index_map (stay VMEM-resident); single-buffered."""
    try:
        return pl.BlockSpec(shape, lambda i: (0, 0), pipeline_mode=pl.Buffered(1))
    except TypeError:  # older BlockSpec signature without pipeline_mode
        return pl.BlockSpec(shape, lambda i: (0, 0))


def actor_kernel(x_ref, w1_ref, b1_ref, w2_ref, b2_ref, w3_ref, b3_ref, o_ref):
    """Fused 3-layer MLP on one batch tile: relu(xW1+b1) -> relu(.W2+b2) -> tanh(.W3+b3).

    x arrives as f32 and is cast to bf16 in-kernel (hidden under MXU work).
    Weights are bf16, accumulation + biases are f32, output is stored bf16.
    """
    x = x_ref[...].astype(jnp.bfloat16)  # (tb, state_dim)

    h1 = jnp.dot(x, w1_ref[...], preferred_element_type=jnp.float32) + b1_ref[...]
    h1 = jnp.maximum(h1, 0.0).astype(jnp.bfloat16)

    h2 = jnp.dot(h1, w2_ref[...], preferred_element_type=jnp.float32) + b2_ref[...]
    h2 = jnp.maximum(h2, 0.0).astype(jnp.bfloat16)

    h3 = jnp.dot(h2, w3_ref[...], preferred_element_type=jnp.float32) + b3_ref[...]
    o_ref[...] = jnp.tanh(h3).astype(o_ref.dtype)


def prepare_actor_params(w1, b1, w2, b2, w3, b3):
    """One-time param prep: pad hidden/action dims to multiples of 128 and cast
    weights to bf16 (biases stay f32). Zero padding is exact: padded columns are
    0 through bias/ReLU and contribute nothing to downstream matmuls."""
    state_dim, fc1 = w1.shape
    fc2 = w2.shape[1]
    action_dim = w3.shape[1]

    fc1p = _round_up(fc1, 128)
    fc2p = _round_up(fc2, 128)
    adp = _round_up(action_dim, 128)

    def pad2(a, rows, cols):
        return jnp.pad(a, ((0, rows - a.shape[0]), (0, cols - a.shape[1])))

    w1p = pad2(w1, state_dim, fc1p).astype(jnp.bfloat16)
    b1p = pad2(b1, 1, fc1p).astype(jnp.float32)
    w2p = pad2(w2, fc1p, fc2p).astype(jnp.bfloat16)
    b2p = pad2(b2, 1, fc2p).astype(jnp.float32)
    w3p = pad2(w3, fc2p, adp).astype(jnp.bfloat16)
    b3p = pad2(b3, 1, adp).astype(jnp.float32)
    return (w1p, b1p, w2p, b2p, w3p, b3p), action_dim


@functools.partial(jax.jit, static_argnames=("action_dim", "block_b"))
def actor_forward(state, w1, b1, w2, b2, w3, b3, *, action_dim, block_b=1024):
    """state: (B, state_dim) f32. Weights pre-prepared (bf16, lane-padded)."""
    B, state_dim = state.shape
    adp = w3.shape[1]

    tb = _choose_batch_tile(B, block_b)
    Bp = _round_up(B, tb)
    if Bp != B:
        state = jnp.pad(state, ((0, Bp - B), (0, 0)))

    grid = (Bp // tb,)

    out = pl.pallas_call(
        actor_kernel,
        out_shape=jax.ShapeDtypeStruct((Bp, adp), jnp.bfloat16),
        grid=grid,
        in_specs=[
            pl.BlockSpec((tb, state_dim), lambda i: (i, 0)),
            _resident_spec(w1.shape), _resident_spec(b1.shape),
            _resident_spec(w2.shape), _resident_spec(b2.shape),
            _resident_spec(w3.shape), _resident_spec(b3.shape),
        ],
        out_specs=pl.BlockSpec((tb, adp), lambda i: (i, 0)),
        compiler_params=pltpu.CompilerParams(
            dimension_semantics=("parallel",)),
    )(state, w1, b1, w2, b2, w3, b3)

    return out[:B, :action_dim].astype(jnp.float32)


def init_actor_params(key, state_dim, action_dim, fc1_units=400, fc2_units=300):
    """Deterministic init mimicking the PyTorch module:
    fc1/fc2: U(-1/sqrt(fan_in), 1/sqrt(fan_in)) for weight & bias,
    fc3.weight: U(-3e-3, 3e-3), fc3.bias: default U(-1/sqrt(fan_in), 1/sqrt(fan_in)).
    Weights returned as (in, out) f32 for direct x @ W use."""
    k1, k2, k3, k4, k5, k6 = jax.random.split(key, 6)

    def lin(kw, kb, fan_in, fan_out):
        bound = 1.0 / jnp.sqrt(jnp.float32(fan_in))
        w = jax.random.uniform(kw, (fan_in, fan_out), jnp.float32, -bound, bound)
        b = jax.random.uniform(kb, (1, fan_out), jnp.float32, -bound, bound)
        return w, b

    w1, b1 = lin(k1, k2, state_dim, fc1_units)
    w2, b2 = lin(k3, k4, fc1_units, fc2_units)
    # fc3: weight overridden to U(-0.003, 0.003); bias keeps default init
    w3 = jax.random.uniform(k5, (fc2_units, action_dim), jnp.float32, -0.003, 0.003)
    b3_bound = 1.0 / jnp.sqrt(jnp.float32(fc2_units))
    b3 = jax.random.uniform(k6, (1, action_dim), jnp.float32, -b3_bound, b3_bound)
    return w1, b1, w2, b2, w3, b3


def actor_reference_bf16(state, w1, b1, w2, b2, w3, b3):
    """Pure-JAX reference with the same bf16 weight/activation carry + f32 accumulation."""
    x = state.astype(jnp.bfloat16)
    h1 = jnp.dot(x, w1.astype(jnp.bfloat16), preferred_element_type=jnp.float32) + b1
    h1 = jnp.maximum(h1, 0.0).astype(jnp.bfloat16)
    h2 = jnp.dot(h1, w2.astype(jnp.bfloat16), preferred_element_type=jnp.float32) + b2
    h2 = jnp.maximum(h2, 0.0).astype(jnp.bfloat16)
    return jnp.tanh(jnp.dot(h2, w3.astype(jnp.bfloat16), preferred_element_type=jnp.float32) + b3)


def actor_reference_f32(state, w1, b1, w2, b2, w3, b3):
    x = jnp.maximum(state @ w1 + b1, 0.0)
    x = jnp.maximum(x @ w2 + b2, 0.0)
    return jnp.tanh(x @ w3 + b3)


if __name__ == "__main__":
    # Small shapes consistent with the module's forward: batch=8 states of dim 16,
    # action_dim=8, hidden sizes 400/300 (module defaults).
    B, STATE_DIM, ACTION_DIM = 8, 16, 8
    FC1, FC2 = 400, 300

    key = jax.random.PRNGKey(0)
    k_params, k_state = jax.random.split(key)

    raw_params = init_actor_params(k_params, STATE_DIM, ACTION_DIM, FC1, FC2)
    state = jax.random.normal(k_state, (B, STATE_DIM), jnp.float32)

    prepped, action_dim = prepare_actor_params(*raw_params)

    out = actor_forward(state, *prepped, action_dim=action_dim)
    out = jax.block_until_ready(out)

    ref_bf16 = actor_reference_bf16(state, *raw_params)
    ref_f32 = actor_reference_f32(state, *raw_params)

    assert out.shape == (B, ACTION_DIM), out.shape
    assert jnp.allclose(out, ref_bf16, atol=5e-3, rtol=5e-3), "mismatch vs bf16 JAX reference"
    assert jnp.allclose(out, ref_f32, atol=3e-2, rtol=3e-2), "mismatch vs f32 JAX reference"

    print("KERNEL_OK")
</pallas_src>

<mosaic_0001>
module attributes {stable_mosaic.version = 11 : i64} {
  func.func @actor_kernel(%arg0: i32, %arg1: memref<16x16xf32, #tpu.memory_space<vmem>>, %arg2: memref<16x512xbf16, #tpu.memory_space<vmem>>, %arg3: memref<1x512xf32, #tpu.memory_space<vmem>>, %arg4: memref<512x384xbf16, #tpu.memory_space<vmem>>, %arg5: memref<1x384xf32, #tpu.memory_space<vmem>>, %arg6: memref<384x128xbf16, #tpu.memory_space<vmem>>, %arg7: memref<1x128xf32, #tpu.memory_space<vmem>>, %arg8: memref<16x128xbf16, #tpu.memory_space<vmem>>) attributes {dimension_semantics = [#tpu.dimension_semantics<parallel>], iteration_bounds = array<i64: 1>, scalar_prefetch = 0 : i64, scratch_operands = 0 : i64, tpu.core_type = #tpu.core_type<tc>, window_params = [{transform_indices = @transform_0, window_bounds = array<i64: 16, 16>}, {pipeline_mode = #tpu.pipeline_mode<synchronous>, transform_indices = @transform_1, window_bounds = array<i64: 16, 512>}, {pipeline_mode = #tpu.pipeline_mode<synchronous>, transform_indices = @transform_2, window_bounds = array<i64: 1, 512>}, {pipeline_mode = #tpu.pipeline_mode<synchronous>, transform_indices = @transform_3, window_bounds = array<i64: 512, 384>}, {pipeline_mode = #tpu.pipeline_mode<synchronous>, transform_indices = @transform_4, window_bounds = array<i64: 1, 384>}, {pipeline_mode = #tpu.pipeline_mode<synchronous>, transform_indices = @transform_5, window_bounds = array<i64: 384, 128>}, {pipeline_mode = #tpu.pipeline_mode<synchronous>, transform_indices = @transform_6, window_bounds = array<i64: 1, 128>}, {transform_indices = @transform_7, window_bounds = array<i64: 16, 128>}]} {
    %c0 = arith.constant 0 : index
    %c0_0 = arith.constant 0 : index
    %0 = vector.load %arg1[%c0, %c0_0] : memref<16x16xf32, #tpu.memory_space<vmem>>, vector<16x16xf32>
    %1 = arith.truncf %0 : vector<16x16xf32> to vector<16x16xbf16>
    %c0_1 = arith.constant 0 : index
    %c0_2 = arith.constant 0 : index
    %2 = vector.load %arg2[%c0_1, %c0_2] : memref<16x512xbf16, #tpu.memory_space<vmem>>, vector<16x512xbf16>
    %cst = arith.constant dense<0.000000e+00> : vector<16x512xf32>
    %3 = tpu.matmul %1, %2, %cst {dimension_numbers = #tpu.dot_dimension_numbers<[1], [0], [0], [1], [0, 0, 1, 1], [], []>} : vector<16x16xbf16>, vector<16x512xbf16>, vector<16x512xf32> -> vector<16x512xf32>
    %c0_3 = arith.constant 0 : index
    %c0_4 = arith.constant 0 : index
    %4 = vector.load %arg3[%c0_3, %c0_4] : memref<1x512xf32, #tpu.memory_space<vmem>>, vector<1x512xf32>
    %5 = vector.broadcast %4 : vector<1x512xf32> to vector<16x512xf32>
    %6 = arith.addf %3, %5 : vector<16x512xf32>
    %cst_5 = arith.constant 0.000000e+00 : f32
    %7 = vector.broadcast %cst_5 : f32 to vector<16x512xf32>
    %8 = arith.maximumf %6, %7 : vector<16x512xf32>
    %9 = arith.truncf %8 : vector<16x512xf32> to vector<16x512xbf16>
    %c0_6 = arith.constant 0 : index
    %c0_7 = arith.constant 0 : index
    %10 = vector.load %arg4[%c0_6, %c0_7] : memref<512x384xbf16, #tpu.memory_space<vmem>>, vector<512x384xbf16>
    %cst_8 = arith.constant dense<0.000000e+00> : vector<16x384xf32>
    %11 = tpu.matmul %9, %10, %cst_8 {dimension_numbers = #tpu.dot_dimension_numbers<[1], [0], [0], [1], [0, 0, 1, 1], [], []>} : vector<16x512xbf16>, vector<512x384xbf16>, vector<16x384xf32> -> vector<16x384xf32>
    %c0_9 = arith.constant 0 : index
    %c0_10 = arith.constant 0 : index
    %12 = vector.load %arg5[%c0_9, %c0_10] : memref<1x384xf32, #tpu.memory_space<vmem>>, vector<1x384xf32>
    %13 = vector.broadcast %12 : vector<1x384xf32> to vector<16x384xf32>
    %14 = arith.addf %11, %13 : vector<16x384xf32>
    %cst_11 = arith.constant 0.000000e+00 : f32
    %15 = vector.broadcast %cst_11 : f32 to vector<16x384xf32>
    %16 = arith.maximumf %14, %15 : vector<16x384xf32>
    %17 = arith.truncf %16 : vector<16x384xf32> to vector<16x384xbf16>
    %c0_12 = arith.constant 0 : index
    %c0_13 = arith.constant 0 : index
    %18 = vector.load %arg6[%c0_12, %c0_13] : memref<384x128xbf16, #tpu.memory_space<vmem>>, vector<384x128xbf16>
    %cst_14 = arith.constant dense<0.000000e+00> : vector<16x128xf32>
    %19 = tpu.matmul %17, %18, %cst_14 {dimension_numbers = #tpu.dot_dimension_numbers<[1], [0], [0], [1], [0, 0, 1, 1], [], []>} : vector<16x384xbf16>, vector<384x128xbf16>, vector<16x128xf32> -> vector<16x128xf32>
    %c0_15 = arith.constant 0 : index
    %c0_16 = arith.constant 0 : index
    %20 = vector.load %arg7[%c0_15, %c0_16] : memref<1x128xf32, #tpu.memory_space<vmem>>, vector<1x128xf32>
    %21 = vector.broadcast %20 : vector<1x128xf32> to vector<16x128xf32>
    %22 = arith.addf %19, %21 : vector<16x128xf32>
    %23 = math.tanh %22 : vector<16x128xf32>
    %24 = arith.truncf %23 : vector<16x128xf32> to vector<16x128xbf16>
    %c0_17 = arith.constant 0 : index
    %c0_18 = arith.constant 0 : index
    %25 = vector.load %arg8[%c0_17, %c0_18] : memref<16x128xbf16, #tpu.memory_space<vmem>>, vector<16x128xbf16>
    tpu.vector_store %arg8[%c0_17, %c0_18], %24 {strides = array<i32>} : memref<16x128xbf16, #tpu.memory_space<vmem>>, vector<16x128xbf16>,
    return
  }
  func.func @transform_0(%arg0: i32) -> (i32, i32) {
    %c0_i32 = arith.constant 0 : i32
    %c0_i32_0 = arith.constant 0 : i32
    return %arg0, %c0_i32 : i32, i32
  }
  func.func @transform_1(%arg0: i32) -> (i32, i32) {
    %c0_i32 = arith.constant 0 : i32
    %c0_i32_0 = arith.constant 0 : i32
    %c0_i32_1 = arith.constant 0 : i32
    return %c0_i32, %c0_i32_0 : i32, i32
  }
  func.func @transform_2(%arg0: i32) -> (i32, i32) {
    %c0_i32 = arith.constant 0 : i32
    %c0_i32_0 = arith.constant 0 : i32
    %c0_i32_1 = arith.constant 0 : i32
    return %c0_i32, %c0_i32_0 : i32, i32
  }
  func.func @transform_3(%arg0: i32) -> (i32, i32) {
    %c0_i32 = arith.constant 0 : i32
    %c0_i32_0 = arith.constant 0 : i32
    %c0_i32_1 = arith.constant 0 : i32
    return %c0_i32, %c0_i32_0 : i32, i32
  }
  func.func @transform_4(%arg0: i32) -> (i32, i32) {
    %c0_i32 = arith.constant 0 : i32
    %c0_i32_0 = arith.constant 0 : i32
    %c0_i32_1 = arith.constant 0 : i32
    return %c0_i32, %c0_i32_0 : i32, i32
  }
  func.func @transform_5(%arg0: i32) -> (i32, i32) {
    %c0_i32 = arith.constant 0 : i32
    %c0_i32_0 = arith.constant 0 : i32
    %c0_i32_1 = arith.constant 0 : i32
    return %c0_i32, %c0_i32_0 : i32, i32
  }
  func.func @transform_6(%arg0: i32) -> (i32, i32) {
    %c0_i32 = arith.constant 0 : i32
    %c0_i32_0 = arith.constant 0 : i32
    %c0_i32_1 = arith.constant 0 : i32
    return %c0_i32, %c0_i32_0 : i32, i32
  }
  func.func @transform_7(%arg0: i32) -> (i32, i32) {
    %c0_i32 = arith.constant 0 : i32
    %c0_i32_0 = arith.constant 0 : i32
    return %arg0, %c0_i32 : i32, i32
  }
}

</mosaic_0001>

<bundles_post_ra>
// kernel: actor_forward.1
= control target key start
LH: loop header
LB: loop body
LE: loop exit
PB: predicated region body
PF: predicated region fallthrough
CT: control target
= control target key end

     0   :  { %12 = vsyncpa [#allocation3], 0  ;;  %s1972_s0 = inlined_call_operand.vmem [shape: f32[16,16], index: 0, kind: input, shape index: {}]   ;;  %s1973_s1 = inlined_call_operand.hbm [shape: bf16[16,512], index: 1, kind: input, shape index: {}]   ;;  %s1974_s2 = inlined_call_operand.vmem [shape: f32[1,512], index: 2, kind: input, shape index: {}]   ;;  %s1975_s3 = inlined_call_operand.hbm [shape: bf16[512,384], index: 3, kind: input, shape index: {}]   ;;  %s1976_s4 = inlined_call_operand.vmem [shape: f32[1,384], index: 4, kind: input, shape index: {}]   ;;  %s1977_s5 = inlined_call_operand.hbm [shape: bf16[384,128], index: 5, kind: input, shape index: {}]   ;;  %s1978_s6 = inlined_call_operand.vmem [shape: f32[1,128], index: 6, kind: input, shape index: {}]   ;;  %s1979_s7 = inlined_call_operand.vmem [shape: bf16[16,128], index: 7, kind: output, shape index: {}]  }
   0x1   :  { %13 = vsyncpa [#allocation5], 0  ;;  %s1835_s24 = smov [#allocation4]   ;;  %s1765_s28 = scalar_lea.hbm %s1975_s3, 12288 }
   0x2   :  { %s35_s25 = sshll.u32 %s1835_s24, 4  ;;  %p1766_p0 = scmp.ne.s32.totalorder %s1975_s3, %s1765_s28  ;;  %s36_s25 = int_to_ptr.vmem [resolvable:$true] %s35_s25 }
   0x3   :  { %p1769_p1 = scmp.lt.u32.totalorder %s1765_s28, %s1975_s3 }
   0x5   :  { %p1771_p2 = pnand %p1769_p1, %p1766_p0 }
   0x7   :  { %1774 = shalt.err (!%p1771_p2)
}
   0x8   :  { %s1775_s10 = scalar_lea.vmem %s36_s25, 12288  ;;  %p1780_p4 = scmp.lt.s32.totalorder %s36_s25, %s36_s25 }
   0x9   :  { %p1776_p3 = scmp.ne.s32.totalorder %s36_s25, %s1775_s10  ;;  %p1781_p5 = scmp.lt.s32.totalorder %s1775_s10, %s1775_s10 }
   0xb   :  { %p1782_p6 = por %p1781_p5, %p1780_p4 }
   0xd   :  { %p1783_p7 = pnand %p1782_p6, %p1776_p3 }
   0xf   :  { %1786 = shalt.err (!%p1783_p7)
}
  0x10   :  { %s1836_s11 = smov 192   ;;  %s1837_s12 = smov 12  }
  0x11   :  { %41 = dma.hbm_to_vmem [thread:$0]  %s1975_s3, 12288, %s36_s25, [#allocation5], %s1836_s11, %s1836_s11, %s1837_s12  }
  0x12   :  { %s1838_s15 = smov [#allocation2]   ;;  %s1787_s19 = scalar_lea.hbm %s1973_s1, 512 }
  0x13   :  { %s21_s16 = sshll.u32 %s1838_s15, 4  ;;  %p1788_p8 = scmp.ne.s32.totalorder %s1973_s1, %s1787_s19  ;;  %s22_s16 = int_to_ptr.vmem [resolvable:$true] %s21_s16 }
  0x14   :  { %p1791_p9 = scmp.lt.u32.totalorder %s1787_s19, %s1973_s1 }
  0x16   :  { %p1793_p10 = pnand %p1791_p9, %p1788_p8 }
  0x18   :  { %1796 = shalt.err (!%p1793_p10)
}
  0x19   :  { %s1797_s24 = scalar_lea.vmem %s22_s16, 512  ;;  %p1802_p12 = scmp.lt.s32.totalorder %s22_s16, %s22_s16 }
  0x1a   :  { %p1798_p11 = scmp.ne.s32.totalorder %s22_s16, %s1797_s24  ;;  %p1803_p13 = scmp.lt.s32.totalorder %s1797_s24, %s1797_s24 }
  0x1c   :  { %p1804_p0 = por %p1803_p13, %p1802_p12 }
  0x1e   :  { %p1805_p1 = pnand %p1804_p0, %p1798_p11 }
  0x20   :  { %1808 = shalt.err (!%p1805_p1)
}
  0x21   :  { %s1839_s3 = smov 256   ;;  %s1840_s25 = smov 16  }
  0x22   :  { %27 = dma.hbm_to_vmem [thread:$0]  %s1973_s1, 512, %s22_s16, [#allocation3], %s1839_s3, %s1839_s3, %s1840_s25  }
  0x23   :  { %s1841_s28 = smov [#allocation6]   ;;  %s1809_s9 = scalar_lea.hbm %s1977_s5, 3072 }
  0x24   :  { %s49_s29 = sshll.u32 %s1841_s28, 4  ;;  %p1810_p2 = scmp.ne.s32.totalorder %s1977_s5, %s1809_s9  ;;  %s50_s29 = int_to_ptr.vmem [resolvable:$true] %s49_s29 }
  0x25   :  { %p1813_p3 = scmp.lt.u32.totalorder %s1809_s9, %s1977_s5 }
  0x27   :  { %p1815_p4 = pnand %p1813_p3, %p1810_p2 }
  0x29   :  { %1818 = shalt.err (!%p1815_p4)
}
  0x2a   :  { %s1819_s14 = scalar_lea.vmem %s50_s29, 3072  ;;  %p1824_p6 = scmp.lt.s32.totalorder %s50_s29, %s50_s29 }
  0x2b   :  { %p1820_p5 = scmp.ne.s32.totalorder %s50_s29, %s1819_s14  ;;  %p1825_p7 = scmp.lt.s32.totalorder %s1819_s14, %s1819_s14 }
  0x2d   :  { %p1826_p8 = por %p1825_p7, %p1824_p6 }
  0x2f   :  { %p1827_p9 = pnand %p1826_p8, %p1820_p5 }
  0x31   :  { %1830 = shalt.err (!%p1827_p9)
}
  0x32   :  { %s1842_s1 = smov 64   ;;  %s1843_s15 = smov 4  }
  0x33   :  { %55 = dma.hbm_to_vmem [thread:$0]  %s1977_s5, 3072, %s50_s29, [#allocation5], %s1842_s1, %s1842_s1, %s1843_s15  }
  0x34   :  { %1831 = dma.done.wait [#allocation3], 512  }
  0x35   :  { %1832 = vsyncadd [#allocation3], 4294966784 }
  0x36   :  { %1833 = dma.done.wait [#allocation5], 15360  }
  0x37   :  { %1834 = vsyncadd [#allocation5], 4294951936  ;;  %v1844_v0 = vmov 0   ;;  %v1603_v1 = vld [vmem:[#allocation2 + $0x4] ss:$16 sps:$4 sm:$0xff]   ;;  %v69_v4 = vld [vmem:[%s1972_s0 + $0x8] sm:$0xff]  ;;  %v77_v58 = vlaneseq }
  0x38   :  { %153 = vmatprep.mubr.bf16.mxu0 %v1844_v0  ;;  %196 = vmatprep.mubr.bf16.mxu1 %v1844_v0  ;;  %v1605_v2 = vld [vmem:[#allocation2] ss:$16 sps:$4 sm:$0xff]   ;;  %v1606_v6 = vld [vmem:[#allocation2 + $0xc] ss:$16 sps:$4 sm:$0xff]   ;;  %vm117_vm0 = vcmask 130048   ;;  %vm1846_vm1 = vmmov 0  }
  0x39   :  { %v68_v3 = vld [vmem:[%s1972_s0] sm:$0xff]  ;;  %121 = vmatprep.subr.bf16.mxu0 %v1603_v1  ;;  %v1608_v7 = vld [vmem:[#allocation2 + $0x8] ss:$16 sps:$4 sm:$0xff]   ;;  %164 = vmatprep.subr.bf16.mxu1 %v1606_v6  ;;  %v1615_v13 = vld [vmem:[#allocation4 + $0x30] ss:$12 sps:$4 sm:$0xff]   ;;  %v1929_v59 = vshrl.u32 %v77_v58, 7 }
  0x3a   :  { %v70_v5 = vpack.c.bf16 %v69_v4, %v68_v3  ;;  %122 = vmatpush1.bf16.msra.mxu0 %v1605_v2  ;;  %v1609_v8 = vld [vmem:[#allocation4] ss:$12 sps:$4 sm:$0xff]   ;;  %v1611_v9 = vld [vmem:[#allocation4 + $0x4] ss:$12 sps:$4 sm:$0xff]   ;;  %165 = vmatpush1.bf16.msra.mxu1 %v1608_v7  ;;  %v1614_v10 = vld [vmem:[#allocation4 + $0x1c] ss:$12 sps:$4 sm:$0xff]  }
  0x3b   :  { %876 = vmatprep.subr.bf16.mxu0 %v1611_v9  ;;  %v1612_v11 = vld [vmem:[#allocation4 + $0x18] ss:$12 sps:$4 sm:$0xff]   ;;  %v1617_v12 = vld [vmem:[#allocation4 + $0x34] ss:$12 sps:$4 sm:$0xff]   ;;  %v1626_v20 = vld [vmem:[#allocation4 + $0x7c] ss:$12 sps:$4 sm:$0xff]  }
  0x3c   :  { %v1620_v14 = vld [vmem:[#allocation4 + $0x4c] ss:$12 sps:$4 sm:$0xff]   ;;  %v1618_v15 = vld [vmem:[#allocation4 + $0x48] ss:$12 sps:$4 sm:$0xff]   ;;  %v1623_v16 = vld [vmem:[#allocation4 + $0x64] ss:$12 sps:$4 sm:$0xff]  }
  0x3d   :  { %1356 = vmatmul.mubr.msk.bf16.vlgmr.msra.gmra.mrb[0].mxu0 %vm117_vm0, %v70_v5  ;;  %1357 = vmatmul.mubr.msk.bf16.vlgmr.msra.gmra.mrb[0].mxu1 %vm117_vm0, %v70_v5  ;;  %v1636_v17 = vld [vmem:[#allocation4 + $0xc8] ss:$12 sps:$4 sm:$0xff]   ;;  %v1621_v19 = vld [vmem:[#allocation4 + $0x60] ss:$12 sps:$4 sm:$0xff]   ;;  %v1624_v23 = vld [vmem:[#allocation4 + $0x78] ss:$12 sps:$4 sm:$0xff]  }
  0x3e   :  { %877 = vmatpush1.bf16.msra.mxu0 %v1609_v8  ;;  %v1637_v18 = vld [vmem:[#allocation4 + $0x8] ss:$12 sps:$4 sm:$0xff]   ;;  %1488 = vmatprep.subr.bf16.mxu1 %v1636_v17  ;;  %v1641_v21 = vld [vmem:[#allocation4 + $0xe0] ss:$12 sps:$4 sm:$0xff]   ;;  %v1646_v24 = vld [vmem:[#allocation4 + $0xf8] ss:$12 sps:$4 sm:$0xff]  }
  0x3f   :  { %878 = vmatprep.subr.bf16.mxu0 %v1614_v10  ;;  %1489 = vmatpush3.bf16.msra.mxu1 %v1637_v18  ;;  %v1642_v22 = vld [vmem:[#allocation4 + $0x20] ss:$12 sps:$4 sm:$0xff]   ;;  %v1647_v25 = vld [vmem:[#allocation4 + $0x38] ss:$12 sps:$4 sm:$0xff]   ;;  %v1627_v27 = vld [vmem:[#allocation4 + $0x90] ss:$12 sps:$4 sm:$0xff]  }
  0x40   :  { %1490 = vmatprep.subr.bf16.mxu1 %v1641_v21  ;;  %v1629_v26 = vld [vmem:[#allocation4 + $0x94] ss:$12 sps:$4 sm:$0xff]   ;;  %v1651_v28 = vld [vmem:[#allocation4 + $0x110] ss:$12 sps:$4 sm:$0xff]   ;;  %v1632_v30 = vld [vmem:[#allocation4 + $0xac] ss:$12 sps:$4 sm:$0xff]  }
  0x41   :  { %v1652_v29 = vld [vmem:[#allocation4 + $0x50] ss:$12 sps:$4 sm:$0xff]   ;;  %v1656_v31 = vld [vmem:[#allocation4 + $0x128] ss:$12 sps:$4 sm:$0xff]   ;;  %v1661_v35 = vld [vmem:[#allocation4 + $0x140] ss:$12 sps:$4 sm:$0xff]  }
  0x42   :  { %879 = vmatpush1.bf16.msra.mxu0 %v1612_v11  ;;  %v1630_v32 = vld [vmem:[#allocation4 + $0xa8] ss:$12 sps:$4 sm:$0xff]   ;;  %v1635_v33 = vld [vmem:[#allocation4 + $0xc4] ss:$12 sps:$4 sm:$0xff]   ;;  %v1633_v36 = vld [vmem:[#allocation4 + $0xc0] ss:$12 sps:$4 sm:$0xff]  }
  0x43   :  { %880 = vmatprep.subr.bf16.mxu0 %v1617_v12  ;;  %1491 = vmatpush3.bf16.msra.mxu1 %v1642_v22  ;;  %v1657_v34 = vld [vmem:[#allocation4 + $0x68] ss:$12 sps:$4 sm:$0xff]   ;;  %v1662_v38 = vld [vmem:[#allocation4 + $0x80] ss:$12 sps:$4 sm:$0xff]   ;;  %v1638_v39 = vld [vmem:[#allocation4 + $0xd8] ss:$12 sps:$4 sm:$0xff]  }
  0x44   :  { %1492 = vmatprep.subr.bf16.mxu1 %v1646_v24  ;;  %v1640_v37 = vld [vmem:[#allocation4 + $0xdc] ss:$12 sps:$4 sm:$0xff]   ;;  %v1645_v40 = vld [vmem:[#allocation4 + $0xf4] ss:$12 sps:$4 sm:$0xff]   ;;  %v1650_v42 = vld [vmem:[#allocation4 + $0x10c] ss:$12 sps:$4 sm:$0xff]  }
  0x45   :  { %v1643_v41 = vld [vmem:[#allocation4 + $0xf0] ss:$12 sps:$4 sm:$0xff]   ;;  %v1648_v43 = vld [vmem:[#allocation4 + $0x108] ss:$12 sps:$4 sm:$0xff]   ;;  %v1653_v45 = vld [vmem:[#allocation4 + $0x120] ss:$12 sps:$4 sm:$0xff]  }
  0x46   :  { %881 = vmatpush1.bf16.msra.mxu0 %v1615_v13  ;;  %v1655_v44 = vld [vmem:[#allocation4 + $0x124] ss:$12 sps:$4 sm:$0xff]   ;;  %v1660_v46 = vld [vmem:[#allocation4 + $0x13c] ss:$12 sps:$4 sm:$0xff]   ;;  %v1665_v48 = vld [vmem:[#allocation4 + $0x154] ss:$12 sps:$4 sm:$0xff]  }
  0x47   :  { %882 = vmatprep.subr.bf16.mxu0 %v1620_v14  ;;  %1493 = vmatpush3.bf16.msra.mxu1 %v1647_v25  ;;  %v1658_v47 = vld [vmem:[#allocation4 + $0x138] ss:$12 sps:$4 sm:$0xff]   ;;  %v1663_v50 = vld [vmem:[#allocation4 + $0x150] ss:$12 sps:$4 sm:$0xff]   ;;  %v1668_v54 = vld [vmem:[#allocation4 + $0x168] ss:$12 sps:$4 sm:$0xff]  }
  0x48   :  { %1494 = vmatprep.subr.bf16.mxu1 %v1651_v28  ;;  %v1666_v49 = vld [vmem:[#allocation4 + $0x158] ss:$12 sps:$4 sm:$0xff]   ;;  %v1671_v53 = vld [vmem:[#allocation4 + $0x170] ss:$12 sps:$4 sm:$0xff]   ;;  %v1676_v57 = vld [vmem:[#allocation4 + $0x248] ss:$12 sps:$4 sm:$0xff]  }
  0x49   :  { %v1667_v51 = vld [vmem:[#allocation4 + $0x98] ss:$12 sps:$4 sm:$0xff]   ;;  %v1672_v55 = vld [vmem:[#allocation4 + $0xb0] ss:$12 sps:$4 sm:$0xff]   ;;  %v79_v60 = vsub.s32 0, %v1929_v59  ;;  %v83_v62 = vsub.s32 1, %v1929_v59 }
  0x4a   :  { %883 = vmatpush1.bf16.msra.mxu0 %v1618_v15  ;;  %v1670_v52 = vld [vmem:[#allocation4 + $0x16c] ss:$12 sps:$4 sm:$0xff]   ;;  %v1675_v56 = vld [vmem:[#allocation4 + $0x184] ss:$12 sps:$4 sm:$0xff]   ;;  %v75_v61 = vld [vmem:[%s1974_s2] sm:$0xf] }
  0x4b   :  { %884 = vmatprep.subr.bf16.mxu0 %v1623_v16  ;;  %1495 = vmatpush3.bf16.msra.mxu1 %v1652_v29  ;;  %v87_v63 = vsub.s32 2, %v1929_v59  ;;  %v91_v0 = vsub.s32 3, %v1929_v59  ;;  %v80_v1 = vrot.slane %v75_v61, %v79_v60  ;;  %v84_v2 = vrot.slane %v75_v61, %v83_v62  ;;  %v1707_v58 = vld [vmem:[#allocation4 + $0x218] ss:$12 sps:$4 sm:$0xff]   ;;  %v1754_v59 = vld [vmem:[#allocation6 + $0x88] sm:$0xff]  }
  0x4c   :  { %1496 = vmatprep.subr.bf16.mxu1 %v1656_v31  ;;  %v1677_v31 = vld [vmem:[#allocation4 + $0x188] ss:$12 sps:$4 sm:$0xff]  }
  0x4d   :  { %v88_v3 = vrot.slane %v75_v61, %v87_v63  ;;  %v92_v5 = vrot.slane %v75_v61, %v91_v0  ;;  %v1710_v61 = vld [vmem:[#allocation4 + $0x22c] ss:$12 sps:$4 sm:$0xff]   ;;  %v1711_v0 = vld [vmem:[#allocation4 + $0x2f0] ss:$12 sps:$4 sm:$0xff]  }
  0x4e   :  { %885 = vmatpush1.bf16.msra.mxu0 %v1621_v19 }
  0x4f   :  { %886 = vmatprep.subr.bf16.mxu0 %v1626_v20  ;;  %1497 = vmatpush3.bf16.msra.mxu1 %v1657_v34  ;;  %v1681_v34 = vld [vmem:[#allocation4 + $0x260] ss:$12 sps:$4 sm:$0xff]  }
  0x50   :  { %1498 = vmatprep.subr.bf16.mxu1 %v1661_v35 }
  0x52   :  { %887 = vmatpush1.bf16.msra.mxu0 %v1624_v23 }
  0x53   :  { %888 = vmatprep.subr.bf16.mxu0 %v1629_v26  ;;  %1499 = vmatpush3.bf16.msra.mxu1 %v1662_v38  ;;  %v1682_v38 = vld [vmem:[#allocation4 + $0x1a0] ss:$12 sps:$4 sm:$0xff]  }
  0x54   :  { %1500 = vmatprep.subr.bf16.mxu1 %v1666_v49  ;;  %v1693_v49 = vld [vmem:[#allocation4 + $0x1e0] ss:$12 sps:$4 sm:$0xff]  }
  0x56   :  { %889 = vmatpush1.bf16.msra.mxu0 %v1627_v27 }
  0x57   :  { %890 = vmatprep.subr.bf16.mxu0 %v1632_v30  ;;  %1501 = vmatpush3.bf16.msra.mxu1 %v1667_v51  ;;  %v1673_v30 = vld [vmem:[#allocation4 + $0x180] ss:$12 sps:$4 sm:$0xff]   ;;  %v1700_v51 = vld [vmem:[#allocation4 + $0x1fc] ss:$12 sps:$4 sm:$0xff]  }
  0x58   :  { %1502 = vmatprep.subr.bf16.mxu1 %v1671_v53  ;;  %v1698_v53 = vld [vmem:[#allocation4 + $0x1f8] ss:$12 sps:$4 sm:$0xff]  }
  0x5a   :  { %891 = vmatpush1.bf16.msra.mxu0 %v1630_v32 }
  0x5b   :  { %892 = vmatprep.subr.bf16.mxu0 %v1635_v33  ;;  %1503 = vmatpush3.bf16.msra.mxu1 %v1672_v55  ;;  %v1680_v33 = vld [vmem:[#allocation4 + $0x19c] ss:$12 sps:$4 sm:$0xff]   ;;  %v1705_v55 = vld [vmem:[#allocation4 + $0x214] ss:$12 sps:$4 sm:$0xff]  }
  0x5c   :  { %1510 = vmatprep.subr.bf16.mxu1 %v1676_v57  ;;  %v1703_v57 = vld [vmem:[#allocation4 + $0x210] ss:$12 sps:$4 sm:$0xff]  }
  0x5e   :  { %893 = vmatpush1.bf16.msra.mxu0 %v1633_v36 }
  0x5f   :  { %894 = vmatprep.subr.bf16.mxu0 %v1640_v37  ;;  %v1678_v37 = vld [vmem:[#allocation4 + $0x198] ss:$12 sps:$4 sm:$0xff]  }
  0x62   :  { %895 = vmatpush1.bf16.msra.mxu0 %v1638_v39  ;;  %v1685_v39 = vld [vmem:[#allocation4 + $0x1b4] ss:$12 sps:$4 sm:$0xff]  }
  0x63   :  { %896 = vmatprep.subr.bf16.mxu0 %v1645_v40  ;;  %v1686_v40 = vld [vmem:[#allocation4 + $0x278] ss:$12 sps:$4 sm:$0xff]  }
  0x66   :  { %897 = vmatpush1.bf16.msra.mxu0 %v1643_v41  ;;  %v1683_v41 = vld [vmem:[#allocation4 + $0x1b0] ss:$12 sps:$4 sm:$0xff]  }
  0x67   :  { %898 = vmatprep.subr.bf16.mxu0 %v1650_v42  ;;  %v1687_v42 = vld [vmem:[#allocation4 + $0x1b8] ss:$12 sps:$4 sm:$0xff]  }
  0x6a   :  { %899 = vmatpush1.bf16.msra.mxu0 %v1648_v43  ;;  %v1690_v43 = vld [vmem:[#allocation4 + $0x1cc] ss:$12 sps:$4 sm:$0xff]  }
  0x6b   :  { %900 = vmatprep.subr.bf16.mxu0 %v1655_v44  ;;  %v1691_v44 = vld [vmem:[#allocation4 + $0x290] ss:$12 sps:$4 sm:$0xff]  }
  0x6e   :  { %901 = vmatpush1.bf16.msra.mxu0 %v1653_v45  ;;  %v1688_v45 = vld [vmem:[#allocation4 + $0x1c8] ss:$12 sps:$4 sm:$0xff]  }
  0x6f   :  { %902 = vmatprep.subr.bf16.mxu0 %v1660_v46  ;;  %v1692_v46 = vld [vmem:[#allocation4 + $0x1d0] ss:$12 sps:$4 sm:$0xff]  }
  0x72   :  { %903 = vmatpush1.bf16.msra.mxu0 %v1658_v47  ;;  %v1695_v47 = vld [vmem:[#allocation4 + $0x1e4] ss:$12 sps:$4 sm:$0xff]  }
  0x73   :  { %904 = vmatprep.subr.bf16.mxu0 %v1665_v48  ;;  %v1696_v48 = vld [vmem:[#allocation4 + $0x2a8] ss:$12 sps:$4 sm:$0xff]  }
  0x76   :  { %905 = vmatpush1.bf16.msra.mxu0 %v1663_v50  ;;  %v1697_v50 = vld [vmem:[#allocation4 + $0x1e8] ss:$12 sps:$4 sm:$0xff]  }
  0x77   :  { %906 = vmatprep.subr.bf16.mxu0 %v1670_v52  ;;  %v1701_v52 = vld [vmem:[#allocation4 + $0x2c0] ss:$12 sps:$4 sm:$0xff]  }
  0x7a   :  { %907 = vmatpush1.bf16.msra.mxu0 %v1668_v54  ;;  %v1702_v54 = vld [vmem:[#allocation4 + $0x200] ss:$12 sps:$4 sm:$0xff]  }
  0x7b   :  { %919 = vmatprep.subr.bf16.mxu0 %v1675_v56  ;;  %v1706_v56 = vld [vmem:[#allocation4 + $0x2d8] ss:$12 sps:$4 sm:$0xff]  }
 0x110   :  { %v155_v4 = vpop.f32.mrb[0].mxu0  ;;  %v198_v10 = vpop.f32.mrb[0].mxu1 }
 0x111   :  { %v156_v6 = vadd.f32 %v155_v4, %v80_v1  ;;  %v157_v7 = vpop.f32.mrb[1].mxu0  ;;  %v199_v13 = vadd.f32 %v198_v10, %v88_v3  ;;  %v200_v14 = vpop.f32.mrb[1].mxu1  ;;  %v1713_v4 = vld [vmem:[#allocation4 + $0x240] ss:$12 sps:$4 sm:$0xff]   ;;  %v1722_v10 = vld [vmem:[#allocation4 + $0x288] ss:$12 sps:$4 sm:$0xff]  }
 0x112   :  { %v158_v8 = vadd.f32 %v157_v7, %v84_v2  ;;  %v159_v9 = vpop.f32.mrb[2].mxu0  ;;  %v201_v16 = vadd.f32 %v200_v14, %v92_v5  ;;  %v202_v17 = vpop.f32.mrb[2].mxu1  ;;  %v1721_v7 = vld [vmem:[#allocation4 + $0x274] ss:$12 sps:$4 sm:$0xff]   ;;  %v1728_v14 = vld [vmem:[#allocation4 + $0x2b8] ss:$12 sps:$4 sm:$0xff]  }
 0x113   :  { %v160_v11 = vadd.f32 %v159_v9, %v80_v1  ;;  %v161_v12 = vpop.f32.mrb[3].mxu0  ;;  %v207_v18 = vmax.f32 %v156_v6, 0.0  ;;  %v209_v20 = vmax.f32 %v199_v13, 0.0  ;;  %v203_v21 = vadd.f32 %v202_v17, %v88_v3  ;;  %v204_v22 = vpop.f32.mrb[3].mxu1  ;;  %v1708_v1 = vld [vmem:[#allocation4 + $0x228] ss:$12 sps:$4 sm:$0xff]  }
 0x114   :  { %v162_v15 = vadd.f32 %v161_v12, %v84_v2  ;;  %v208_v23 = vmax.f32 %v158_v8, 0.0  ;;  %v210_v25 = vmax.f32 %v201_v16, 0.0  ;;  %v205_v26 = vadd.f32 %v204_v22, %v92_v5  ;;  %v1712_v2 = vld [vmem:[#allocation4 + $0x230] ss:$12 sps:$4 sm:$0xff]   ;;  %v1716_v6 = vld [vmem:[#allocation4 + $0x258] ss:$12 sps:$4 sm:$0xff]  }
 0x115   :  { %v211_v19 = vmax.f32 %v160_v11, 0.0  ;;  %v213_v28 = vmax.f32 %v203_v21, 0.0  ;;  %v1715_v3 = vld [vmem:[#allocation4 + $0x244] ss:$12 sps:$4 sm:$0xff]   ;;  %v1718_v5 = vld [vmem:[#allocation4 + $0x25c] ss:$12 sps:$4 sm:$0xff]  }
 0x116   :  { %v212_v24 = vmax.f32 %v162_v15, 0.0  ;;  %v214_v32 = vmax.f32 %v205_v26, 0.0  ;;  %v1719_v8 = vld [vmem:[#allocation4 + $0x270] ss:$12 sps:$4 sm:$0xff]   ;;  %v1724_v9 = vld [vmem:[#allocation4 + $0x28c] ss:$12 sps:$4 sm:$0xff]  }
 0x117   :  { %v215_v27 = vpack.c.bf16 %v211_v19, %v207_v18  ;;  %v1944_v35 = vpack.c.bf16 %v213_v28, %v209_v20  ;;  %v1727_v11 = vld [vmem:[#allocation4 + $0x2a4] ss:$12 sps:$4 sm:$0xff]   ;;  %v1725_v12 = vld [vmem:[#allocation4 + $0x2a0] ss:$12 sps:$4 sm:$0xff]   ;;  %v1730_v13 = vld [vmem:[#allocation4 + $0x2bc] ss:$12 sps:$4 sm:$0xff]  }
 0x118   :  { %v216_v29 = vpack.c.bf16 %v212_v24, %v208_v23  ;;  %v218_v36 = vpack.c.bf16 %v214_v32, %v210_v25  ;;  %v1733_v15 = vld [vmem:[#allocation4 + $0x2d4] ss:$12 sps:$4 sm:$0xff]   ;;  %v1731_v16 = vld [vmem:[#allocation4 + $0x2d0] ss:$12 sps:$4 sm:$0xff]   ;;  %v1736_v17 = vld [vmem:[#allocation4 + $0x2ec] ss:$12 sps:$4 sm:$0xff]  }
 0x119   :  { %v1734_v18 = vld [vmem:[#allocation4 + $0x2e8] ss:$12 sps:$4 sm:$0xff]   ;;  %v1737_v19 = vld [vmem:[#allocation6 + $0x40] sm:$0xff]   ;;  %v1743_v25 = vld [vmem:[#allocation6 + $0x58] sm:$0xff]  }
 0x11a   :  { %908 = vmatprep.mubr.bf16.mxu0 %v216_v29  ;;  %994 = vmatprep.mubr.bf16.mxu1 %v216_v29  ;;  %v1738_v20 = vld [vmem:[#allocation6] sm:$0xff]   ;;  %v1739_v21 = vld [vmem:[#allocation6 + $0x48] sm:$0xff]   ;;  %v1741_v23 = vld [vmem:[#allocation6 + $0x50] sm:$0xff]  }
 0x11b   :  { %909 = vmatmul.mubr.bf16.vlgmr.msra.gmra.mrb[4].mxu0 %v215_v27  ;;  %995 = vmatmul.mubr.bf16.vlgmr.msra.gmra.mrb[4].mxu1 %v215_v27  ;;  %v1740_v22 = vld [vmem:[#allocation6 + $0x8] sm:$0xff]   ;;  %v1742_v24 = vld [vmem:[#allocation6 + $0x10] sm:$0xff]   ;;  %v1744_v26 = vld [vmem:[#allocation6 + $0x18] sm:$0xff]  }
 0x11c   :  { %920 = vmatpush1.bf16.msra.mxu0 %v1673_v30  ;;  %1511 = vmatpush3.bf16.msra.mxu1 %v1677_v31  ;;  %v1745_v27 = vld [vmem:[#allocation6 + $0x60] sm:$0xff]   ;;  %v1747_v29 = vld [vmem:[#allocation6 + $0x68] sm:$0xff]   ;;  %v1749_v31 = vld [vmem:[#allocation6 + $0x70] sm:$0xff]  }
 0x11d   :  { %921 = vmatprep.subr.bf16.mxu0 %v1680_v33  ;;  %1512 = vmatprep.subr.bf16.mxu1 %v1681_v34  ;;  %v1746_v28 = vld [vmem:[#allocation6 + $0x20] sm:$0xff]   ;;  %v1748_v30 = vld [vmem:[#allocation6 + $0x28] sm:$0xff]   ;;  %v1750_v32 = vld [vmem:[#allocation6 + $0x30] sm:$0xff]  }
 0x11e   :  { %1035 = vmatprep.mubr.bf16.mxu1 %v218_v36  ;;  %951 = vmatprep.mubr.bf16.mxu0 %v218_v36  ;;  %v1751_v33 = vld [vmem:[#allocation6 + $0x78] sm:$0xff]  }
 0x11f   :  { %v1752_v34 = vld [vmem:[#allocation6 + $0x38] sm:$0xff]  }
 0x120   :  { %922 = vmatpush1.bf16.msra.mxu0 %v1678_v37  ;;  %1513 = vmatpush3.bf16.msra.mxu1 %v1682_v38 }
 0x121   :  { %923 = vmatprep.subr.bf16.mxu0 %v1685_v39  ;;  %1514 = vmatprep.subr.bf16.mxu1 %v1686_v40 }
 0x124   :  { %924 = vmatpush1.bf16.msra.mxu0 %v1683_v41  ;;  %1515 = vmatpush3.bf16.msra.mxu1 %v1687_v42  ;;  %v347_v42 = vld [vmem:[%s1976_s4] sm:$0x7] }
 0x125   :  { %925 = vmatprep.subr.bf16.mxu0 %v1690_v43  ;;  %1516 = vmatprep.subr.bf16.mxu1 %v1691_v44  ;;  %v360_v43 = vrot.slane %v347_v42, %v87_v63 }
 0x128   :  { %926 = vmatpush1.bf16.msra.mxu0 %v1688_v45  ;;  %1517 = vmatpush3.bf16.msra.mxu1 %v1692_v46 }
 0x129   :  { %927 = vmatprep.subr.bf16.mxu0 %v1695_v47  ;;  %1518 = vmatprep.subr.bf16.mxu1 %v1696_v48 }
 0x12c   :  { %928 = vmatpush1.bf16.msra.mxu0 %v1693_v49  ;;  %1519 = vmatpush3.bf16.msra.mxu1 %v1697_v50 }
 0x12d   :  { %929 = vmatprep.subr.bf16.mxu0 %v1700_v51  ;;  %1520 = vmatprep.subr.bf16.mxu1 %v1701_v52 }
 0x130   :  { %930 = vmatpush1.bf16.msra.mxu0 %v1698_v53  ;;  %1521 = vmatpush3.bf16.msra.mxu1 %v1702_v54 }
 0x131   :  { %931 = vmatprep.subr.bf16.mxu0 %v1705_v55  ;;  %1522 = vmatprep.subr.bf16.mxu1 %v1706_v56 }
 0x134   :  { %932 = vmatpush1.bf16.msra.mxu0 %v1703_v57  ;;  %1523 = vmatpush3.bf16.msra.mxu1 %v1707_v58  ;;  %v352_v57 = vrot.slane %v347_v42, %v79_v60  ;;  %v356_v58 = vrot.slane %v347_v42, %v83_v62  ;;  %v1755_v60 = vld [vmem:[#allocation6 + $0x90] sm:$0xff]   ;;  %v1756_v62 = vld [vmem:[#allocation6 + $0x98] sm:$0xff]  }
 0x135   :  { %933 = vmatprep.subr.bf16.mxu0 %v1710_v61  ;;  %1524 = vmatprep.subr.bf16.mxu1 %v1711_v0 }
 0x138   :  { %934 = vmatpush1.bf16.msra.mxu0 %v1708_v1  ;;  %1525 = vmatpush3.bf16.msra.mxu1 %v1712_v2 }
 0x139   :  { %935 = vmatprep.subr.bf16.mxu0 %v1715_v3  ;;  %1532 = vmatprep.subr.bf16.mxu1 %v1737_v19 }
 0x13b   :  { %1036 = vmatmul.mubr.bf16.vlgmr.msra.gmra.mrb[8].mxu1 %v1944_v35 }
 0x13c   :  { %936 = vmatpush1.bf16.msra.mxu0 %v1713_v4  ;;  %1533 = vmatpush3.bf16.msra.mxu1 %v1738_v20 }
 0x13d   :  { %937 = vmatprep.subr.bf16.mxu0 %v1718_v5  ;;  %1534 = vmatprep.subr.bf16.mxu1 %v1739_v21 }
 0x140   :  { %938 = vmatpush1.bf16.msra.mxu0 %v1716_v6  ;;  %1535 = vmatpush3.bf16.msra.mxu1 %v1740_v22 }
 0x141   :  { %939 = vmatprep.subr.bf16.mxu0 %v1721_v7  ;;  %1536 = vmatprep.subr.bf16.mxu1 %v1741_v23  ;;  %v1454_v23 = vld [vmem:[%s1978_s6] ss:$0 sm:$0xff] }
 0x144   :  { %940 = vmatpush1.bf16.msra.mxu0 %v1719_v8  ;;  %1537 = vmatpush3.bf16.msra.mxu1 %v1742_v24 }
 0x145   :  { %941 = vmatprep.subr.bf16.mxu0 %v1724_v9  ;;  %1538 = vmatprep.subr.bf16.mxu1 %v1743_v25 }
 0x148   :  { %942 = vmatpush1.bf16.msra.mxu0 %v1722_v10  ;;  %1539 = vmatpush3.bf16.msra.mxu1 %v1744_v26 }
 0x149   :  { %943 = vmatprep.subr.bf16.mxu0 %v1727_v11  ;;  %1540 = vmatprep.subr.bf16.mxu1 %v1745_v27 }
 0x14c   :  { %944 = vmatpush1.bf16.msra.mxu0 %v1725_v12  ;;  %1541 = vmatpush3.bf16.msra.mxu1 %v1746_v28  ;;  %v1753_v12 = vld [vmem:[#allocation6 + $0x80] sm:$0xff]  }
 0x14d   :  { %945 = vmatprep.subr.bf16.mxu0 %v1730_v13  ;;  %1542 = vmatprep.subr.bf16.mxu1 %v1747_v29  ;;  %v1757_v13 = vld [vmem:[#allocation6 + $0xa0] sm:$0xff]  }
 0x150   :  { %946 = vmatpush1.bf16.msra.mxu0 %v1728_v14  ;;  %1543 = vmatpush3.bf16.msra.mxu1 %v1748_v30  ;;  %v1758_v14 = vld [vmem:[#allocation6 + $0xa8] sm:$0xff]  }
 0x151   :  { %947 = vmatprep.subr.bf16.mxu0 %v1733_v15  ;;  %1544 = vmatprep.subr.bf16.mxu1 %v1749_v31  ;;  %v1759_v15 = vld [vmem:[#allocation6 + $0xb0] sm:$0xff]  }
 0x154   :  { %948 = vmatpush1.bf16.msra.mxu0 %v1731_v16  ;;  %1545 = vmatpush3.bf16.msra.mxu1 %v1750_v32  ;;  %v1760_v16 = vld [vmem:[#allocation6 + $0xb8] sm:$0xff]  }
 0x155   :  { %949 = vmatprep.subr.bf16.mxu0 %v1736_v17  ;;  %1546 = vmatprep.subr.bf16.mxu1 %v1751_v33 }
 0x158   :  { %950 = vmatpush1.bf16.msra.mxu0 %v1734_v18  ;;  %1547 = vmatpush3.bf16.msra.mxu1 %v1752_v34 }
 0x15b   :  { %952 = vmatmul.mubr.bf16.vlgmr.msra.gmra.mrb[4].mxu0 %v1944_v35  ;;  %v1845_v35 = vmov 0.0  }
 0x15c   :  { %1563 = vmatprep.subr.bf16.mxu1 %v1845_v35 }
 0x1ee   :  { %v1504_v36 = vpop.f32.mrb[4].mxu1 }
 0x1ef   :  { %v1505_v37 = vpop.f32.mrb[5].mxu1 }
 0x1f0   :  { %v1506_v38 = vadd.f32 %v1505_v37, %v1504_v36  ;;  %v1507_v39 = vpop.f32.mrb[6].mxu1 }
 0x1f1   :  { %v1508_v40 = vpop.f32.mrb[7].mxu1 }
 0x1f2   :  { %v1509_v41 = vadd.f32 %v1508_v40, %v1507_v39  ;;  %v997_v46 = vadd.f32 %v1506_v38, %v360_v43 }
 0x1f4   :  { %v1000_v50 = vadd.f32 %v1509_v41, %v360_v43 }
 0x20e   :  { %v1526_v44 = vpop.f32.mrb[8].mxu1 }
 0x20f   :  { %v1527_v45 = vpop.f32.mrb[9].mxu1 }
 0x210   :  { %v1528_v47 = vadd.f32 %v1527_v45, %v1526_v44  ;;  %v1529_v48 = vpop.f32.mrb[10].mxu1 }
 0x211   :  { %v1530_v49 = vpop.f32.mrb[11].mxu1 }
 0x212   :  { %v1038_v51 = vadd.f32 %v1528_v47, %v997_v46  ;;  %v1531_v52 = vadd.f32 %v1530_v49, %v1529_v48 }
 0x214   :  { %v1041_v53 = vadd.f32 %v1531_v52, %v1000_v50  ;;  %v1046_v54 = vmax.f32 %v1038_v51, 0.0 }
 0x216   :  { %v1049_v55 = vmax.f32 %v1041_v53, 0.0 }
 0x218   :  { %v1052_v56 = vpack.c.bf16 %v1049_v55, %v1046_v54 }
 0x22e   :  { %v953_v63 = vpop.f32.mrb[4].mxu0 }
 0x22f   :  { %v1583_v61 = vadd.f32 %v953_v63, %v352_v57  ;;  %v955_v0 = vpop.f32.mrb[5].mxu0 }
 0x230   :  { %v1584_v1 = vadd.f32 %v955_v0, %v356_v58  ;;  %v957_v2 = vpop.f32.mrb[6].mxu0 }
 0x231   :  { %v1585_v3 = vadd.f32 %v957_v2, %v352_v57  ;;  %v959_v4 = vpop.f32.mrb[7].mxu0  ;;  %v1044_v6 = vmax.f32 %v1583_v61, 0.0 }
 0x232   :  { %v1586_v5 = vadd.f32 %v959_v4, %v356_v58  ;;  %v1045_v8 = vmax.f32 %v1584_v1, 0.0 }
 0x233   :  { %v1047_v7 = vmax.f32 %v1585_v3, 0.0 }
 0x234   :  { %v1048_v9 = vmax.f32 %v1586_v5, 0.0 }
 0x235   :  { %v1050_v10 = vpack.c.bf16 %v1047_v7, %v1044_v6 }
 0x236   :  { %v1051_v11 = vpack.c.bf16 %v1048_v9, %v1045_v8 }
 0x238   :  { %1284 = vmatprep.mubr.bf16.mxu1 %v1051_v11 }
 0x239   :  { %1285 = vmatmul.mubr.bf16.vlgmr.msra.gmra.mrb[12].mxu1 %v1050_v10 }
 0x23a   :  { %1564 = vmatpush3.bf16.msra.mxu1 %v1753_v12  ;;  %1579 = vmatprep.mubr.msk.bf16.mxu1 %vm1846_vm1, %v1845_v35 }
 0x23b   :  { %1565 = vmatprep.subr.bf16.mxu1 %v1845_v35 }
 0x23e   :  { %1566 = vmatpush3.bf16.msra.mxu1 %v1754_v59 }
 0x23f   :  { %1567 = vmatprep.subr.bf16.mxu1 %v1845_v35 }
 0x242   :  { %1568 = vmatpush3.bf16.msra.mxu1 %v1755_v60 }
 0x243   :  { %1569 = vmatprep.subr.bf16.mxu1 %v1845_v35 }
 0x246   :  { %1570 = vmatpush3.bf16.msra.mxu1 %v1756_v62 }
 0x247   :  { %1571 = vmatprep.subr.bf16.mxu1 %v1845_v35 }
 0x24a   :  { %1572 = vmatpush3.bf16.msra.mxu1 %v1757_v13 }
 0x24b   :  { %1573 = vmatprep.subr.bf16.mxu1 %v1845_v35 }
 0x24e   :  { %1574 = vmatpush3.bf16.msra.mxu1 %v1758_v14 }
 0x24f   :  { %1575 = vmatprep.subr.bf16.mxu1 %v1845_v35 }
 0x252   :  { %1576 = vmatpush3.bf16.msra.mxu1 %v1759_v15 }
 0x253   :  { %1577 = vmatprep.subr.bf16.mxu1 %v1845_v35 }
 0x256   :  { %1578 = vmatpush3.bf16.msra.mxu1 %v1760_v16 }
 0x259   :  { %1580 = vmatmul.mubr.bf16.vlgmr.msra.gmra.mrb[16].mxu1 %v1052_v56 }
 0x30c   :  { %v1548_v17 = vpop.f32.mrb[12].mxu1 }
 0x30d   :  { %v1549_v18 = vpop.f32.mrb[13].mxu1 }
 0x30e   :  { %v1550_v19 = vadd.f32 %v1549_v18, %v1548_v17  ;;  %v1551_v20 = vpop.f32.mrb[14].mxu1 }
 0x30f   :  { %v1552_v21 = vpop.f32.mrb[15].mxu1 }
 0x310   :  { %v1553_v22 = vadd.f32 %v1552_v21, %v1551_v20  ;;  %v1287_v24 = vadd.f32 %v1550_v19, %v1454_v23 }
 0x312   :  { %v1290_v28 = vadd.f32 %v1553_v22, %v1454_v23 }
 0x32c   :  { %v1327_v25 = vpop.f32.mrb[16].mxu1 }
 0x32d   :  { %v1328_v26 = vadd.f32 %v1327_v25, %v1287_v24  ;;  %v1581_v27 = vpop.f32.mrb[17].mxu1 }
 0x32e   :  { %v1330_v29 = vpop.f32.mrb[18].mxu1 }
 0x32f   :  { %v1331_v30 = vadd.f32 %v1330_v29, %v1290_v28  ;;  %v1582_v31 = vpop.f32.mrb[19].mxu1  ;;  %1761 = vtanh.f32 %v1328_v26 }
 0x331   :  { %1763 = vtanh.f32 %v1331_v30 }
 0x339   :  { %v1762_v32 = vpop.eup %1761 }
 0x33b   :  { %v1764_v33 = vpop.eup %1763 }
 0x33c   :  { %v1486_v34 = vpack.c.bf16 %v1764_v33, %v1762_v32 }
 0x33e   :  { %1487 = vst [vmem:[%s1979_s7] sm:$0xff] %v1486_v34  }
 0x33f   :  { %1350 = vsyncpa [#allocation3], 1 }
 0x340   :  { %1351 = vsyncpa [#allocation5], 1 }

</bundles_post_ra>
